<compile_context>
chip_gen: v7x
topology: tpu7x:2x2x1
jax: 0.10.0
libtpu: 0.0.40
codegen_flags: <defaults>
</compile_context>

<pallas_src>
import math

import jax
import jax.numpy as jnp
from jax import lax
from jax.experimental import pallas as pl
from jax.experimental.pallas import tpu as pltpu


def _score_kernel(xm_ref, xk_ref, o_ref):
    """out[q, k] = xm[q, :] . xk[k, :]  ('qd,kd->qk', no materialized transpose)."""
    o_ref[...] = lax.dot_general(
        xm_ref[...],
        xk_ref[...],
        dimension_numbers=(((1,), (1,)), ((), ())),
        preferred_element_type=jnp.float32,
    ).astype(o_ref.dtype)


def _vmem_tile_bytes(tq, tk, D, c_itm, o_itm):
    """Double-buffered q-role + k-role input tiles and output tile."""
    return 2 * tq * D * c_itm + 2 * tk * D * c_itm + 2 * tq * tk * o_itm


def _pick_tiles(Sp, D, c_itm, o_itm, budget):
    """Largest tiles fitting the VMEM budget; prefer tk = Sp (no k axis)."""
    divs = [t for t in (1024, 512, 256, 128) if Sp % t == 0]
    cands = [(tq, Sp) for tq in divs] + [(t, t) for t in divs]
    for tq, tk in cands:
        if _vmem_tile_bytes(tq, tk, D, c_itm, o_itm) <= budget:
            return tq, tk
    return divs[-1], divs[-1]  # smallest square tiles; vmem_limit stretches


def dotp_mixer(
    x_sem,
    x_pos,
    Q,
    K,
    *,
    attention_input="both",
    precision="auto",        # "auto" (bf16 MXU when D>=512), "f32", or "bf16"
    out_dtype=jnp.float32,   # bf16 halves output HBM traffic (kernel is output-bound)
    tq=None,
    tk=None,
):
    """Pallas implementation of DotPMixer.forward.

    x_sem, x_pos: (B, S, D) float32;  Q, K: (D, D) float32
    returns: (B, S, S) out_dtype
    """
    if attention_input not in ("both", "only_pos", "only_sem"):
        raise ValueError(f"bad attention_input: {attention_input}")
    if precision not in ("auto", "f32", "bf16"):
        raise ValueError(f"bad precision: {precision}")

    B, S, D = x_sem.shape
    assert x_pos.shape == (B, S, D)
    assert Q.shape == (D, D) and K.shape == (D, D)

    if precision == "auto":
        compute_dtype = jnp.bfloat16 if D >= 512 else jnp.float32
    else:
        compute_dtype = jnp.bfloat16 if precision == "bf16" else jnp.float32

    hp = lax.Precision.HIGHEST

    # ---- XLA prologue (fused by XLA, negligible vs the S^2 kernel) ---------
    if attention_input == "both":
        x = x_sem + x_pos
    elif attention_input == "only_sem":
        x = x_sem
    else:
        x = x_pos

    M = jnp.dot(Q, K.T, precision=hp) * (1.0 / math.sqrt(D))   # fused weight
    XM = jnp.einsum("bsd,de->bse", x, M, precision=hp).astype(compute_dtype)
    XK = x.astype(compute_dtype)

    # Pad S to a multiple of 128: lane-dense (unmasked) output stores,
    # (8,128)-aligned tiles, and no full-S fallback tile for awkward S.
    Sp = ((S + 127) // 128) * 128
    if Sp != S:
        pad = Sp - S
        XM = jnp.pad(XM, ((0, 0), (0, pad), (0, 0)))
        XK = jnp.pad(XK, ((0, 0), (0, pad), (0, 0)))

    # ---- Tile / VMEM sizing per generation ---------------------------------
    c_itm = jnp.dtype(compute_dtype).itemsize
    o_itm = jnp.dtype(out_dtype).itemsize
    try:
        vmem_phys = int(pltpu.get_tpu_info().vmem_capacity_bytes)
    except Exception:
        vmem_phys = 64 * 1024 * 1024  # conservative: v7x per-TC physical VMEM
    budget = int(0.85 * vmem_phys)    # leave headroom for Mosaic internal scratch

    if tq is None or tk is None:
        a_tq, a_tk = _pick_tiles(Sp, D, c_itm, o_itm, budget)
        tq = a_tq if tq is None else tq
        tk = a_tk if tk is None else tk
    assert Sp % tq == 0 and Sp % tk == 0, "tile sizes must divide padded S"
    assert tq % 8 == 0, "q tile must be a multiple of 8 (sublanes)"
    assert tk % 128 == 0, "k tile must be a multiple of 128 (lanes)"
    n_q, n_k = Sp // tq, Sp // tk

    vmem_limit = int(
        min(max(2 * _vmem_tile_bytes(tq, tk, D, c_itm, o_itm), 32 * 1024 * 1024),
            budget)
    )

    xm_spec = pl.BlockSpec((pl.Squeezed(), tq, D), lambda b, qi, ki: (b, qi, 0))
    xk_spec = pl.BlockSpec((pl.Squeezed(), tk, D), lambda b, qi, ki: (b, ki, 0))
    o_spec = pl.BlockSpec((pl.Squeezed(), tq, tk), lambda b, qi, ki: (b, qi, ki))

    # Truthful HBM traffic: q-role read once per q tile; k-role re-read once
    # per q tile when there is a real k axis (Pallas elides unchanged blocks).
    k_rereads = n_q if n_k > 1 else 1
    flops = 2 * B * Sp * Sp * D
    bytes_accessed = (
        B * Sp * D * c_itm
        + B * k_rereads * Sp * D * c_itm
        + B * Sp * Sp * o_itm
    )
    cost = pl.CostEstimate(
        flops=int(flops), transcendentals=0, bytes_accessed=int(bytes_accessed)
    )

    out = pl.pallas_call(
        _score_kernel,
        out_shape=jax.ShapeDtypeStruct((B, Sp, Sp), out_dtype),
        grid_spec=pltpu.PrefetchScalarGridSpec(
            num_scalar_prefetch=0,
            grid=(B, n_q, n_k),
            in_specs=[xm_spec, xk_spec],
            out_specs=o_spec,
        ),
        compiler_params=pltpu.CompilerParams(
            dimension_semantics=("parallel", "parallel", "arbitrary"),
            vmem_limit_bytes=vmem_limit,
        ),
        cost_estimate=cost,
    )(XM, XK)

    if Sp != S:
        out = out[:, :S, :S]
    return out


def init_params(key, model_dim):
    """Deterministic init matching nn.init.kaiming_uniform_(W.T, a=sqrt(5)):
    uniform(-1/sqrt(fan_in), 1/sqrt(fan_in)) with fan_in = model_dim."""
    kq, kk = jax.random.split(key)
    bound = 1.0 / math.sqrt(model_dim)
    Q = jax.random.uniform(kq, (model_dim, model_dim), jnp.float32, -bound, bound)
    K = jax.random.uniform(kk, (model_dim, model_dim), jnp.float32, -bound, bound)
    return Q, K


def dotp_mixer_ref(x_sem, x_pos, Q, K, attention_input="both"):
    """Pure-JAX reference matching the PyTorch forward (unfused)."""
    if attention_input == "both":
        x = x_sem + x_pos
    elif attention_input == "only_sem":
        x = x_sem
    else:
        x = x_pos
    hp = lax.Precision.HIGHEST
    Qx = jnp.dot(x, Q, precision=hp)
    Kx = jnp.dot(x, K, precision=hp)
    return jnp.einsum("bqd,bkd->bqk", Qx, Kx, precision=hp) / math.sqrt(x.shape[-1])


if __name__ == "__main__":
    B, S, D = 2, 8, 32  # batch, seq_len, model_dim

    key = jax.random.PRNGKey(0)
    k_sem, k_pos, k_param = jax.random.split(key, 3)
    x_sem = jax.random.normal(k_sem, (B, S, D), jnp.float32)
    x_pos = jax.random.normal(k_pos, (B, S, D), jnp.float32)
    Q, K = init_params(k_param, D)

    ref_both = dotp_mixer_ref(x_sem, x_pos, Q, K, "both")

    # f32 path, all three attention_input modes (S=8 -> padded to 128, sliced).
    for mode in ("both", "only_sem", "only_pos"):
        out = jax.block_until_ready(
            dotp_mixer(x_sem, x_pos, Q, K, attention_input=mode)
        )
        ref = dotp_mixer_ref(x_sem, x_pos, Q, K, mode)
        assert out.shape == (B, S, S) and out.dtype == jnp.float32
        assert jnp.allclose(out, ref, atol=1e-3, rtol=1e-3), f"mismatch ({mode}, f32)"

    # bf16 scores (output-bound kernel -> main roofline lever) -- looser tol.
    out_bf16o = jax.block_until_ready(
        dotp_mixer(x_sem, x_pos, Q, K, out_dtype=jnp.bfloat16)
    )
    assert out_bf16o.dtype == jnp.bfloat16
    assert jnp.allclose(out_bf16o.astype(jnp.float32), ref_both,
                        atol=5e-2, rtol=5e-2), "mismatch (bf16 out)"

    # bf16 MXU compute path (operands bf16, f32 accumulation).
    out_bf16c = jax.block_until_ready(
        dotp_mixer(x_sem, x_pos, Q, K, precision="bf16")
    )
    assert jnp.allclose(out_bf16c, ref_both, atol=0.25, rtol=0.1), "mismatch (bf16 compute)"

    # Exercise the real tiled grid / index maps: S=256 with forced 128x128
    # output tiles -> grid (B, 2, 2); q-role XM block reused across the k axis.
    S2 = 256
    k2s, k2p = jax.random.split(jax.random.PRNGKey(1))
    x_sem2 = jax.random.normal(k2s, (B, S2, D), jnp.float32)
    x_pos2 = jax.random.normal(k2p, (B, S2, D), jnp.float32)
    out2 = jax.block_until_ready(
        dotp_mixer(x_sem2, x_pos2, Q, K, tq=128, tk=128)
    )
    ref2 = dotp_mixer_ref(x_sem2, x_pos2, Q, K, "both")
    assert out2.shape == (B, S2, S2)
    assert jnp.allclose(out2, ref2, atol=1e-3, rtol=1e-3), "mismatch (tiled f32)"

    # Awkward S (not a multiple of 128): pad-to-128-and-slice path.
    S3 = 200
    x_sem3 = jax.random.normal(jax.random.PRNGKey(2), (B, S3, D), jnp.float32)
    x_pos3 = jax.random.normal(jax.random.PRNGKey(3), (B, S3, D), jnp.float32)
    out3 = jax.block_until_ready(
        dotp_mixer(x_sem3, x_pos3, Q, K, attention_input="both")
    )
    ref3 = dotp_mixer_ref(x_sem3, x_pos3, Q, K, "both")
    assert out3.shape == (B, S3, S3)
    assert jnp.allclose(out3, ref3, atol=1e-3, rtol=1e-3), "mismatch (padded S)"

    print("KERNEL_OK")
</pallas_src>

<mosaic_0001>
module attributes {stable_mosaic.version = 11 : i64} {
  func.func @_score_kernel(%arg0: i32, %arg1: i32, %arg2: i32, %arg3: memref<1x128x32xf32, #tpu.memory_space<vmem>>, %arg4: memref<1x128x32xf32, #tpu.memory_space<vmem>>, %arg5: memref<1x128x128xf32, #tpu.memory_space<vmem>>) attributes {dimension_semantics = [#tpu.dimension_semantics<parallel>, #tpu.dimension_semantics<parallel>, #tpu.dimension_semantics<arbitrary>], iteration_bounds = array<i64: 2, 1, 1>, scalar_prefetch = 0 : i64, scratch_operands = 0 : i64, tpu.core_type = #tpu.core_type<tc>, window_params = [{transform_indices = @transform_0, window_bounds = array<i64: 1, 128, 32>}, {transform_indices = @transform_1, window_bounds = array<i64: 1, 128, 32>}, {transform_indices = @transform_2, window_bounds = array<i64: 1, 128, 128>}]} {
    %c0 = arith.constant 0 : index
    %c0_0 = arith.constant 0 : index
    %c0_1 = arith.constant 0 : index
    %0 = vector.load %arg3[%c0, %c0_0, %c0_1] : memref<1x128x32xf32, #tpu.memory_space<vmem>>, vector<1x128x32xf32>
    %1 = vector.shape_cast %0 : vector<1x128x32xf32> to vector<128x32xf32>
    %c0_2 = arith.constant 0 : index
    %c0_3 = arith.constant 0 : index
    %c0_4 = arith.constant 0 : index
    %2 = vector.load %arg4[%c0_2, %c0_3, %c0_4] : memref<1x128x32xf32, #tpu.memory_space<vmem>>, vector<1x128x32xf32>
    %3 = vector.shape_cast %2 : vector<1x128x32xf32> to vector<128x32xf32>
    %cst = arith.constant dense<0.000000e+00> : vector<128x128xf32>
    %4 = tpu.matmul %1, %3, %cst {dimension_numbers = #tpu.dot_dimension_numbers<[1], [1], [0], [0], [0, 0, 1, 0], [], []>} : vector<128x32xf32>, vector<128x32xf32>, vector<128x128xf32> -> vector<128x128xf32>
    %c0_5 = arith.constant 0 : index
    %c0_6 = arith.constant 0 : index
    %c0_7 = arith.constant 0 : index
    %5 = vector.load %arg5[%c0_5, %c0_6, %c0_7] : memref<1x128x128xf32, #tpu.memory_space<vmem>>, vector<1x128x128xf32>
    %6 = vector.shape_cast %5 : vector<1x128x128xf32> to vector<128x128xf32>
    %7 = vector.shape_cast %4 : vector<128x128xf32> to vector<1x128x128xf32>
    tpu.vector_store %arg5[%c0_5, %c0_6, %c0_7], %7 {strides = array<i32>} : memref<1x128x128xf32, #tpu.memory_space<vmem>>, vector<1x128x128xf32>,
    return
  }
  func.func @transform_0(%arg0: i32, %arg1: i32, %arg2: i32) -> (i32, i32, i32) {
    %c0_i32 = arith.constant 0 : i32
    %c0_i32_0 = arith.constant 0 : i32
    return %arg0, %arg1, %c0_i32 : i32, i32, i32
  }
  func.func @transform_1(%arg0: i32, %arg1: i32, %arg2: i32) -> (i32, i32, i32) {
    %c0_i32 = arith.constant 0 : i32
    %c0_i32_0 = arith.constant 0 : i32
    return %arg0, %arg2, %c0_i32 : i32, i32, i32
  }
  func.func @transform_2(%arg0: i32, %arg1: i32, %arg2: i32) -> (i32, i32, i32) {
    %c0_i32 = arith.constant 0 : i32
    return %arg0, %arg1, %arg2 : i32, i32, i32
  }
}

</mosaic_0001>

<bundles_post_ra>
// kernel: tpu_custom_call.1
= control target key start
LH: loop header
LB: loop body
LE: loop exit
PB: predicated region body
PF: predicated region fallthrough
CT: control target
= control target key end

     0   :  { %7 = vsyncpa [#allocation3], 0  ;;  %s1246_s0 = inlined_call_operand.vmem [shape: f32[2,128,32], index: 0, kind: input, shape index: {}]   ;;  %s1247_s1 = inlined_call_operand.vmem [shape: f32[2,128,32], index: 1, kind: input, shape index: {}]   ;;  %s1248_s2 = inlined_call_operand.hbm [shape: f32[2,128,128], index: 2, kind: output, shape index: {}]  }
   0x1   :  { %9 = vsyncpa [#allocation3 + $0x1], 0  ;;  %s983_s9 = smov 0   ;;  %s985_s10 = smov 0  }
   0x2   :  { %s987_s11 = smov 0   ;;  %s989_s12 = smov 0  }
   0x3   :  { %s991_s13 = smov 0   ;;  %s993_s14 = smov 0  }
   0x4 LB: > { %s626_s15 = sadd.s32 4294967295, %s963_s14   ;;  %s627_s16 = sadd.s32 4294967294, %s963_s14   ;;  %s963_s14 = sphi %s993_s14, %s15_s14   ;;  %s959_s13 = sphi %s991_s13, %s1257_s13   ;;  %s955_s12 = sphi %s989_s12, %s1256_s12   ;;  %s951_s11 = sphi %s987_s11, %s1255_s11   ;;  %s947_s10 = sphi %s985_s10, %s1254_s10   ;;  %s943_s9 = sphi %s983_s9, %s1253_s9  }
   0x5   : > { %s34_s17 = sadd.s32 1, %s959_s13  ;;  %s101_s18 = sadd.s32 1, %s951_s11 }
   0x6   : > { %p36_p0 = scmp.ge.s32.totalorder %s34_s17, 2  ;;  %p111_p1 = scmp.ne.s32.totalorder %s951_s11, %s947_s10 }
   0x7   : > { %p112_p2 = scmp.eq.s32.totalorder %s626_s15, 1  ;;  %p117_p3 = scmp.ne.s32.totalorder %s947_s10, %s943_s9 }
   0x8   : > { %s1259_s17 = smov (%p36_p0, %s34_s17), 0  ;;  %p118_p5 = scmp.eq.s32.totalorder %s627_s16, 1 }
   0x9   : > { %p1023_p4 = por %p112_p2, %p111_p1  ;;  %s94_s20 = ssub.s32 %s959_s13, %s1259_s17 }
   0xa   : > { %p630_p6 = scmp.ge.s32.totalorder %s963_s14, 1  ;;  %p99_p7 = scmp.eq.s32.totalorder %s94_s20, 0 }
   0xb   : > { %p1030_p8 = por %p118_p5, %p117_p3  ;;  %p162_p9 = scmp.lt.s32.totalorder %s963_s14, 3 }
   0xc   : > { %s1036_s22 = scalar_select %p99_p7, %s951_s11, %s101_s18  }
   0xd   : > { %p163_p10 = pnand %p630_p6, %p162_p9 }
   0xe   : > { %p198_p11 = scmp.lt.s32.totalorder (!%p163_p10), %s955_s12, 1  ;;  %vm250_vm0 = vcmask (!%p163_p10), 261120   ;;  %s194_s3 = sand.u32 (!%p163_p10), 1, %s947_s10  }
   0xf   : > { %166 = sbr.rel (%p163_p10) target bundleno = 333 (0x14d), region = 28  ;;  %vm1047_vm1 = vmpackc.low (!%p163_p10), %vm250_vm0, %vm250_vm0  ;;  %s631_s4 = sshll.u32 (!%p163_p10), %s194_s3, 7 }
  0x10   : > { %s1171_s5 = scalar_lea.vmem (!%p163_p10), [#allocation2], %s631_s4  ;;  %s675_s6 = sshll.u32 (!%p163_p10), %s955_s12, 11 }
  0x11   : > { %s525_s7 = sshll.u32 (!%p163_p10), %s1171_s5, 4  ;;  %s1190_s16 = scalar_lea.hbm (!%p163_p10), %s1248_s2, %s675_s6  ;;  %s1192_s7 = int_to_ptr.vmem [resolvable:$true] %s525_s7 }
  0x12   : > { %s885_s18 = scalar_lea.vmem (!%p163_p10), %s1192_s7, 2048  ;;  %s965_s20 = smov (!%p163_p10), [#allocation2]  }
  0x13   : > { %p886_p12 = scmp.ne.s32.totalorder (!%p163_p10), %s1192_s7, %s885_s18 }
  0x15   : > { %p887_p13 = pnand (!%p163_p10), %p886_p12, %p1023_p4 }
  0x16   : > { %s199_s23 = scalar_select %p198_p11, %s955_s12, 1 }
  0x17   : > { %s1200_s12 = scalar_lea.sflag [#allocation3], %s194_s3  ;;  %p888_p0 = pneg %p887_p13 }
  0x18   : > { %s673_s24 = sshll.u32 %s199_s23, 7  ;;  %s889_s23 = sshll.u32 %s965_s20, 4  ;;  %s890_s23 = int_to_ptr.vmem [resolvable:$false] %s889_s23 }
  0x19   : > { %s1043_s27 = scalar_lea.vmem %s1247_s1, %s673_s24  ;;  %s1058_s30 = scalar_lea.vmem %s1246_s0, %s673_s24 }
  0x1a   : > { %v234_v1 = vld [vmem:[%s1043_s27] sm:$0xff]  ;;  %v235_v2 = vld [vmem:[%s1043_s27 + $0x8] sm:$0xff]  ;;  %v236_v3 = vld [vmem:[%s1043_s27 + $0x10] sm:$0xff]  ;;  %s891_s24 = scalar_lea.vmem %s890_s23, 4096  ;;  %p892_p1 = scmp.lt.s32.totalorder %s1192_s7, %s890_s23 }
  0x1b   : > { %v764_v4 = vpack.c.bf16 %v235_v2, %v234_v1  ;;  %v237_v5 = vld [vmem:[%s1043_s27 + $0x18] sm:$0xff]  ;;  %v218_v7 = vld [vmem:[%s1058_s30] sm:$0xff]  ;;  %v239_v10 = vld [vmem:[%s1043_s27 + $0x28] sm:$0xff]  ;;  %p893_p2 = scmp.lt.s32.totalorder %s891_s24, %s885_s18 }
  0x1c   : > { %v770_v6 = vpack.c.bf16 %v237_v5, %v236_v3  ;;  %v226_v8 = vld [vmem:[%s1058_s30 + $0x40] sm:$0xff]  ;;  %740 = vmatprep.mubr.msk.f32.mxu0 %vm250_vm0, %v218_v7  ;;  %v240_v12 = vld [vmem:[%s1043_s27 + $0x30] sm:$0xff]  ;;  %v241_v13 = vld [vmem:[%s1043_s27 + $0x38] sm:$0xff] }
  0x1d   : > { %766 = vmatprep.subr.msk.bf16.mxu0 %vm1047_vm1, %v764_v4  ;;  %812 = vmatprep.subr.msk.bf16.mxu1 %vm1047_vm1, %v764_v4  ;;  %v238_v9 = vld [vmem:[%s1043_s27 + $0x20] sm:$0xff]  ;;  %v782_v14 = vpack.c.bf16 %v241_v13, %v240_v12  ;;  %v243_v16 = vld [vmem:[%s1043_s27 + $0x48] sm:$0xff]  ;;  %v244_v18 = vld [vmem:[%s1043_s27 + $0x50] sm:$0xff]  ;;  %p894_p3 = por %p893_p2, %p892_p1 }
  0x1e   : > { %769 = vmatpush3.bf16.xpose.msk.msra.mxu0 %vm1047_vm1, %v764_v4  ;;  %820 = vmatpush3.bf16.xpose.msk.msra.mxu1 %vm1047_vm1, %v764_v4  ;;  %v776_v11 = vpack.c.bf16 %v239_v10, %v238_v9  ;;  %v242_v15 = vld [vmem:[%s1043_s27 + $0x40] sm:$0xff]  ;;  %v245_v19 = vld [vmem:[%s1043_s27 + $0x58] sm:$0xff]  ;;  %v247_v22 = vld [vmem:[%s1043_s27 + $0x68] sm:$0xff] }
  0x1f   : > { %772 = vmatprep.subr.msk.bf16.mxu0 %vm1047_vm1, %v770_v6  ;;  %813 = vmatprep.subr.msk.bf16.mxu1 %vm1047_vm1, %v770_v6  ;;  %v788_v17 = vpack.c.bf16 %v243_v16, %v242_v15  ;;  %v794_v20 = vpack.c.bf16 %v245_v19, %v244_v18  ;;  %v246_v21 = vld [vmem:[%s1043_s27 + $0x60] sm:$0xff]  ;;  %v248_v24 = vld [vmem:[%s1043_s27 + $0x70] sm:$0xff]  ;;  %v249_v25 = vld [vmem:[%s1043_s27 + $0x78] sm:$0xff]  ;;  %p895_p5 = pnand %p894_p3, %p888_p0 }
  0x20   : > { %752 = vmatprep.mubr.msk.f32.mxu1 %vm250_vm0, %v226_v8  ;;  %v800_v23 = vpack.c.bf16 %v247_v22, %v246_v21  ;;  %v806_v26 = vpack.c.bf16 %v249_v25, %v248_v24  ;;  %v219_v27 = vld [vmem:[%s1058_s30 + $0x8] sm:$0xff]  ;;  %v220_v29 = vld [vmem:[%s1058_s30 + $0x10] sm:$0xff]  ;;  %v221_v31 = vld [vmem:[%s1058_s30 + $0x18] sm:$0xff] }
  0x21   : > { %v227_v28 = vld [vmem:[%s1058_s30 + $0x48] sm:$0xff]  ;;  %v228_v30 = vld [vmem:[%s1058_s30 + $0x50] sm:$0xff]  ;;  %v229_v32 = vld [vmem:[%s1058_s30 + $0x58] sm:$0xff] }
  0x22   : > { %v222_v33 = vld [vmem:[%s1058_s30 + $0x20] sm:$0xff]  ;;  %v223_v35 = vld [vmem:[%s1058_s30 + $0x28] sm:$0xff]  ;;  %v224_v37 = vld [vmem:[%s1058_s30 + $0x30] sm:$0xff] }
  0x23   : > { %v230_v34 = vld [vmem:[%s1058_s30 + $0x60] sm:$0xff]  ;;  %v231_v36 = vld [vmem:[%s1058_s30 + $0x68] sm:$0xff]  ;;  %v232_v38 = vld [vmem:[%s1058_s30 + $0x70] sm:$0xff] }
  0x24   : > { %v225_v39 = vld [vmem:[%s1058_s30 + $0x38] sm:$0xff] }
  0x25   : > { %v233_v40 = vld [vmem:[%s1058_s30 + $0x78] sm:$0xff] }
  0x26   : > { %775 = vmatpush3.bf16.xpose.msk.msra.mxu0 %vm1047_vm1, %v770_v6  ;;  %821 = vmatpush3.bf16.xpose.msk.msra.mxu1 %vm1047_vm1, %v770_v6 }
  0x27   : > { %778 = vmatprep.subr.msk.bf16.mxu0 %vm1047_vm1, %v776_v11  ;;  %814 = vmatprep.subr.msk.bf16.mxu1 %vm1047_vm1, %v776_v11 }
  0x2e   : > { %781 = vmatpush3.bf16.xpose.msk.msra.mxu0 %vm1047_vm1, %v776_v11  ;;  %822 = vmatpush3.bf16.xpose.msk.msra.mxu1 %vm1047_vm1, %v776_v11 }
  0x2f   : > { %784 = vmatprep.subr.msk.bf16.mxu0 %vm1047_vm1, %v782_v14  ;;  %815 = vmatprep.subr.msk.bf16.mxu1 %vm1047_vm1, %v782_v14 }
  0x36   : > { %787 = vmatpush3.bf16.xpose.msk.msra.mxu0 %vm1047_vm1, %v782_v14  ;;  %823 = vmatpush3.bf16.xpose.msk.msra.mxu1 %vm1047_vm1, %v782_v14 }
  0x37   : > { %790 = vmatprep.subr.msk.bf16.mxu0 %vm1047_vm1, %v788_v17  ;;  %816 = vmatprep.subr.msk.bf16.mxu1 %vm1047_vm1, %v788_v17 }
  0x3e   : > { %793 = vmatpush3.bf16.xpose.msk.msra.mxu0 %vm1047_vm1, %v788_v17  ;;  %824 = vmatpush3.bf16.xpose.msk.msra.mxu1 %vm1047_vm1, %v788_v17 }
  0x3f   : > { %796 = vmatprep.subr.msk.bf16.mxu0 %vm1047_vm1, %v794_v20  ;;  %817 = vmatprep.subr.msk.bf16.mxu1 %vm1047_vm1, %v794_v20 }
  0x46   : > { %799 = vmatpush3.bf16.xpose.msk.msra.mxu0 %vm1047_vm1, %v794_v20  ;;  %825 = vmatpush3.bf16.xpose.msk.msra.mxu1 %vm1047_vm1, %v794_v20 }
  0x47   : > { %802 = vmatprep.subr.msk.bf16.mxu0 %vm1047_vm1, %v800_v23  ;;  %818 = vmatprep.subr.msk.bf16.mxu1 %vm1047_vm1, %v800_v23 }
  0x4e   : > { %805 = vmatpush3.bf16.xpose.msk.msra.mxu0 %vm1047_vm1, %v800_v23  ;;  %826 = vmatpush3.bf16.xpose.msk.msra.mxu1 %vm1047_vm1, %v800_v23 }
  0x4f   : > { %808 = vmatprep.subr.msk.bf16.mxu0 %vm1047_vm1, %v806_v26  ;;  %819 = vmatprep.subr.msk.bf16.mxu1 %vm1047_vm1, %v806_v26 }
  0x56   : > { %811 = vmatpush3.bf16.xpose.msk.msra.mxu0 %vm1047_vm1, %v806_v26  ;;  %827 = vmatpush3.bf16.xpose.msk.msra.mxu1 %vm1047_vm1, %v806_v26 }
  0x5d   : > { %741 = vmatmul.mubr.msk.f32.vlgmr.msra.gmra.mrb[0].mxu0 %vm250_vm0, %v219_v27  ;;  %753 = vmatmul.mubr.msk.f32.vlgmr.msra.gmra.mrb[0].mxu1 %vm250_vm0, %v227_v28 }
  0x5e   : > { %743 = vmatprep.mubr.msk.f32.mxu0 %vm250_vm0, %v220_v29  ;;  %755 = vmatprep.mubr.msk.f32.mxu1 %vm250_vm0, %v228_v30 }
  0x61   : > { %744 = vmatmul.mubr.msk.f32.gmra.mrb[2].mxu0 %vm250_vm0, %v221_v31  ;;  %756 = vmatmul.mubr.msk.f32.gmra.mrb[2].mxu1 %vm250_vm0, %v229_v32 }
  0x62   : > { %746 = vmatprep.mubr.msk.f32.mxu0 %vm250_vm0, %v222_v33  ;;  %758 = vmatprep.mubr.msk.f32.mxu1 %vm250_vm0, %v230_v34 }
  0x65   : > { %747 = vmatmul.mubr.msk.f32.gmra.mrb[4].mxu0 %vm250_vm0, %v223_v35  ;;  %759 = vmatmul.mubr.msk.f32.gmra.mrb[4].mxu1 %vm250_vm0, %v231_v36 }
  0x66   : > { %749 = vmatprep.mubr.msk.f32.mxu0 %vm250_vm0, %v224_v37  ;;  %761 = vmatprep.mubr.msk.f32.mxu1 %vm250_vm0, %v232_v38 }
  0x69   : > { %750 = vmatmul.mubr.msk.f32.gmra.mrb[6].mxu0 %vm250_vm0, %v225_v39  ;;  %762 = vmatmul.mubr.msk.f32.gmra.mrb[6].mxu1 %vm250_vm0, %v233_v40 }
 0x130   : > { %v742_v41 = vpop.f32.mrb[0].mxu0  ;;  %v754_v42 = vpop.f32.mrb[0].mxu1 }
 0x131   : > { %493 = vst [vmem:[%s1171_s5 + $0x8] sm:$0xff] %v742_v41  ;;  %501 = vst [vmem:[%s1171_s5 + $0x48] sm:$0xff] %v754_v42  ;;  %v413_v43 = vpop.f32.mrb[1].mxu0  ;;  %v453_v44 = vpop.f32.mrb[1].mxu1 }
 0x132   : > { %492 = vst [vmem:[%s1171_s5] sm:$0xff] %v413_v43  ;;  %500 = vst [vmem:[%s1171_s5 + $0x40] sm:$0xff] %v453_v44 }
 0x134   : > { %v745_v45 = vpop.f32.mrb[2].mxu0  ;;  %v757_v46 = vpop.f32.mrb[2].mxu1 }
 0x135   : > { %495 = vst [vmem:[%s1171_s5 + $0x18] sm:$0xff] %v745_v45  ;;  %503 = vst [vmem:[%s1171_s5 + $0x58] sm:$0xff] %v757_v46  ;;  %v423_v47 = vpop.f32.mrb[3].mxu0  ;;  %v463_v48 = vpop.f32.mrb[3].mxu1 }
 0x136   : > { %494 = vst [vmem:[%s1171_s5 + $0x10] sm:$0xff] %v423_v47  ;;  %502 = vst [vmem:[%s1171_s5 + $0x50] sm:$0xff] %v463_v48 }
 0x138   : > { %v748_v49 = vpop.f32.mrb[4].mxu0  ;;  %v760_v50 = vpop.f32.mrb[4].mxu1 }
 0x139   : > { %497 = vst [vmem:[%s1171_s5 + $0x28] sm:$0xff] %v748_v49  ;;  %505 = vst [vmem:[%s1171_s5 + $0x68] sm:$0xff] %v760_v50  ;;  %v433_v51 = vpop.f32.mrb[5].mxu0  ;;  %v473_v52 = vpop.f32.mrb[5].mxu1 }
 0x13a   : > { %496 = vst [vmem:[%s1171_s5 + $0x20] sm:$0xff] %v433_v51  ;;  %504 = vst [vmem:[%s1171_s5 + $0x60] sm:$0xff] %v473_v52 }
 0x13c   : > { %v751_v53 = vpop.f32.mrb[6].mxu0  ;;  %v763_v54 = vpop.f32.mrb[6].mxu1 }
 0x13d   : > { %499 = vst [vmem:[%s1171_s5 + $0x38] sm:$0xff] %v751_v53  ;;  %507 = vst [vmem:[%s1171_s5 + $0x78] sm:$0xff] %v763_v54  ;;  %v443_v55 = vpop.f32.mrb[7].mxu0  ;;  %v483_v56 = vpop.f32.mrb[7].mxu1 }
 0x13e   : > { %498 = vst [vmem:[%s1171_s5 + $0x30] sm:$0xff] %v443_v55  ;;  %506 = vst [vmem:[%s1171_s5 + $0x70] sm:$0xff] %v483_v56 }
 0x13f   : > { %898 = shalt.err (!%p895_p5)
}
 0x140   : > { %s899_s25 = scalar_lea.hbm %s1190_s16, 2048  ;;  %s903_s28 = scalar_lea.hbm %s1248_s2, 4096 }
 0x141   : > { %p900_p6 = scmp.ne.s32.totalorder %s1190_s16, %s899_s25  ;;  %p904_p10 = scmp.lt.u32.totalorder %s1190_s16, %s1248_s2 }
 0x142   : > { %p905_p11 = scmp.lt.u32.totalorder %s903_s28, %s899_s25  ;;  %p907_p13 = scmp.lt.u32.totalorder %s899_s25, %s1190_s16 }
 0x143   : > { %p901_p7 = pnand %p900_p6, %p1023_p4 }
 0x144   : > { %p906_p12 = por %p905_p11, %p904_p10 }
 0x145   : > { %p902_p9 = pneg %p901_p7 }
 0x146   : > { %p908_p0 = por %p907_p13, %p906_p12 }
 0x148   : > { %p909_p1 = pnand %p908_p0, %p902_p9 }
 0x14a   : > { %912 = shalt.err (!%p909_p1)
}
 0x14b   : > { %s966_s3 = smov 128   ;;  %s967_s4 = smov 8  }
 0x14c   : > { %828 = dma.vmem_to_hbm [thread:$0]  (%p1023_p4), %s1192_s7, 2048, %s1190_s16, %s1200_s12, %s966_s3, %s966_s3, %s967_s4  }
 0x14d PF: > { %p834_p2 = scmp.ge.s32.totalorder %s963_s14, 2  ;;  %s540_s5 = sand.u32 1, %s943_s9  }
 0x14e   : > { %s541_s6 = scalar_lea.sflag [#allocation3], %s540_s5 }
 0x14f   : > { %p831_p3 = pnand %p834_p2, %p1030_p8 }
 0x151   : > { %938 = dma.done.wait (!%p831_p3), %s541_s6, 2048  }
 0x152   : > { %940 = vsyncadd (!%p831_p3), %s541_s6, 4294965248  ;;  %s15_s14 = sadd.s32 1, %s963_s14   ;;  %s1253_s9 = smov %s947_s10 }
 0x153   : > { %p12_p5 = scmp.ge.s32.totalorder %s15_s14, 4   ;;  %s1254_s10 = smov %s951_s11 }
 0x154   : > { %s1255_s11 = smov %s1036_s22  ;;  %s1256_s12 = smov %s959_s13 }
 0x155   : > { %s1257_s13 = smov %s1259_s17  ;;  %14 = sbr.rel (!%p12_p5) target bundleno = 4 (0x4), region = 66 }
 0x15c   :  { %546 = vsyncpa [#allocation3], 1 }
 0x15d   :  { %548 = vsyncpa [#allocation3 + $0x1], 1 }

</bundles_post_ra>
